<compile_context>
chip_gen: v5e
topology: v5e:2x2
jax: 0.10.0
libtpu: 0.0.40
codegen_flags: <defaults>
</compile_context>

<pallas_src>
import jax
import jax.numpy as jnp
from jax import lax
from jax.experimental import pallas as pl
from jax.experimental.pallas import tpu as pltpu


def _ceil_div(a, b):
    return -(-a // b)


def _make_kernel(tk, k_tiles, f_valid, mask_k_tail, w_resident):
    def kernel(x_ref, w_ref, b_ref, num_ref, exp_ref, acc_ref):
        k = pl.program_id(1)

        @pl.when(k == 0)
        def _init():
            acc_ref[...] = jnp.zeros_like(acc_ref)

        x = x_ref[...]                                    # (tn, tk), native dtype
        if mask_k_tail:
            # Last K tile can read past F: zero the out-of-range columns so the
            # contraction only sees valid data (W's padded tail is exact zeros).
            col = lax.broadcasted_iota(jnp.int32, x.shape, 1) + k * tk
            x = jnp.where(col < f_valid, x, jnp.zeros_like(x))

        if w_resident and k_tiles > 1:
            w_blk = w_ref[:, pl.ds(pl.multiple_of(k * tk, tk), tk)]   # resident W, slice K chunk
        else:
            w_blk = w_ref[...]                            # block already (A, tk)

        # y^T chunk: (A, tk) x (tn, tk) contracting the feature dim -> (A, tn).
        # MXU in the operands' native dtype, f32 accumulation.
        acc_ref[...] += lax.dot_general(
            w_blk, x,
            dimension_numbers=(((1,), (1,)), ((), ())),
            preferred_element_type=jnp.float32)

        @pl.when(k == k_tiles - 1)
        def _emit():
            y = acc_ref[...] + b_ref[...]                 # (A, tn)
            e = jnp.exp(jnp.tanh(y) - 1.0)                # max-free softmax weights
            exp_ref[...] = e.astype(exp_ref.dtype)
            num_ref[...] = (e * y).astype(num_ref.dtype)

    return kernel


def omics_attention(features, weight, bias, *, tn_target=1024, tk_target=1024,
                    compute_dtype=None):
    """features: (N, F); weight: (A, F) PyTorch layout; bias: (A,). Returns (N, A)."""
    n, f = features.shape
    a = weight.shape[0]
    out_dtype = features.dtype

    if compute_dtype is not None:
        # Optional bf16 streaming of the big operands (review item 6);
        # accumulation, tanh/exp and the softmax stay in f32.
        features = features.astype(compute_dtype)
        weight = weight.astype(compute_dtype)
    itemsize = jnp.dtype(features.dtype).itemsize

    # N -> lane axis of the transposed (A, N) compute.
    if n <= tn_target:
        tn, n_tiles = n, 1
    else:
        tn = tn_target                       # multiple of 128: lane-dense output blocks
        n_tiles = _ceil_div(n, tn)
    n_pad = n_tiles * tn

    # F -> MXU contraction axis.
    if f <= tk_target:
        tk, k_tiles, f_pad = f, 1, f
    else:
        tk = tk_target                       # multiple of 128
        k_tiles = _ceil_div(f, tk)
        f_pad = k_tiles * tk

    w = weight
    if f_pad != f:
        # Only the tiny (A, F) weight is padded (exact zeros in the K tail);
        # the big feature matrix is streamed unpadded straight from HBM.
        w = jnp.pad(w, ((0, 0), (0, f_pad - f)))
    b_col = bias.reshape(a, 1).astype(jnp.float32)

    mask_k_tail = f_pad != f
    w_resident = (k_tiles == 1) or (a * f_pad * itemsize <= (8 << 20))

    kernel = _make_kernel(tk, k_tiles, f, mask_k_tail, w_resident)

    if w_resident:
        w_spec = pl.BlockSpec((a, f_pad), lambda i, k: (0, 0))     # fully VMEM-resident
        w_vmem = a * f_pad * itemsize
    else:
        w_spec = pl.BlockSpec((a, tk), lambda i, k: (0, k))        # fallback for huge A*F
        w_vmem = 2 * a * tk * itemsize

    # x double-buffer + W + double-buffered (num, e) output blocks + scratch + bias.
    vmem_bytes = (2 * tn * tk * itemsize + w_vmem
                  + 2 * 2 * a * tn * 4 + a * tn * 4 + a * 4)
    vmem_limit = int(min(max(vmem_bytes + (4 << 20), 32 << 20), 56 << 20))

    cost = pl.CostEstimate(
        flops=2 * n * f * a,
        transcendentals=2 * n_pad * a,                              # tanh + exp
        bytes_accessed=(n * f * itemsize + a * f_pad * itemsize
                        + 2 * a * n_pad * 4 + a * 4),
    )

    grid_spec = pltpu.PrefetchScalarGridSpec(
        num_scalar_prefetch=0,
        grid=(n_tiles, k_tiles),                                    # K (reduction) innermost
        in_specs=[
            pl.BlockSpec((tn, tk), lambda i, k: (i, k)),            # x: streamed exactly once
            w_spec,
            pl.BlockSpec((a, 1), lambda i, k: (0, 0)),              # bias: resident
        ],
        out_specs=[
            pl.BlockSpec((a, tn), lambda i, k: (0, i)),             # numerator e*y (transposed)
            pl.BlockSpec((a, tn), lambda i, k: (0, i)),             # softmax weights e (transposed)
        ],
        scratch_shapes=[pltpu.VMEM((a, tn), jnp.float32)],          # y^T accumulator over K
    )

    num_t, exp_t = pl.pallas_call(
        kernel,
        out_shape=(jax.ShapeDtypeStruct((a, n_pad), jnp.float32),
                   jax.ShapeDtypeStruct((a, n_pad), jnp.float32)),
        grid_spec=grid_spec,
        compiler_params=pltpu.CompilerParams(
            dimension_semantics=("parallel", "arbitrary"),
            vmem_limit_bytes=vmem_limit,
        ),
        cost_estimate=cost,
    )(features, w, b_col)

    # Tiny (A, N) epilogue: softmax denominator + exact normalization + transpose
    # back to the module's (N, A) layout, fused by XLA.  The ragged N tail of the
    # kernel outputs is never read here, so the hot kernel needs no N masking.
    if n_pad != n:
        num_t = num_t[:, :n]
        exp_t = exp_t[:, :n]
    den = jnp.sum(exp_t, axis=1, keepdims=True)                     # (A, 1)
    return (num_t / den).T.astype(out_dtype)


def reference(features, weight, bias):
    y = features @ weight.T + bias
    att = jax.nn.softmax(jnp.tanh(y), axis=0)
    return att * y


if __name__ == "__main__":
    # Small shapes consistent with the module's forward:
    # features: (N, feature_dim); nn.Linear(feature_dim -> attention_dim)
    N, feature_dim, attention_dim = 8, 32, 16
    k_x, k_w, k_b = jax.random.split(jax.random.PRNGKey(0), 3)
    features = jax.random.normal(k_x, (N, feature_dim), dtype=jnp.float32)
    weight = jax.random.normal(k_w, (attention_dim, feature_dim), dtype=jnp.float32) * 0.1
    bias = jax.random.normal(k_b, (attention_dim,), dtype=jnp.float32) * 0.1

    out = jax.block_until_ready(omics_attention(features, weight, bias))
    ref = reference(features, weight, bias)
    assert out.shape == (N, attention_dim)
    assert jnp.allclose(out, ref, atol=1e-4, rtol=1e-3), (
        "mismatch vs reference (small), max |err| = "
        f"{float(jnp.max(jnp.abs(out - ref)))}")

    # Multi-tile path with ragged N and F tails (exercises the in-kernel K-tail
    # mask, the resident-W dynamic slice, and the epilogue N-tail handling).
    N2, F2, A2 = 600, 300, 16
    k_x2, k_w2, k_b2 = jax.random.split(jax.random.PRNGKey(1), 3)
    x2 = jax.random.normal(k_x2, (N2, F2), dtype=jnp.float32)
    w2 = jax.random.normal(k_w2, (A2, F2), dtype=jnp.float32) * 0.05
    b2 = jax.random.normal(k_b2, (A2,), dtype=jnp.float32) * 0.05
    out2 = jax.block_until_ready(
        omics_attention(x2, w2, b2, tn_target=256, tk_target=128))
    ref2 = reference(x2, w2, b2)
    assert out2.shape == (N2, A2)
    assert jnp.allclose(out2, ref2, atol=1e-4, rtol=1e-3), (
        "mismatch vs reference (tiled), max |err| = "
        f"{float(jnp.max(jnp.abs(out2 - ref2)))}")

    print("KERNEL_OK")
</pallas_src>

<mosaic_0001>
module attributes {stable_mosaic.version = 11 : i64} {
  func.func @kernel(%arg0: i32, %arg1: i32, %arg2: memref<8x32xf32, #tpu.memory_space<vmem>>, %arg3: memref<16x32xf32, #tpu.memory_space<vmem>>, %arg4: memref<16x1xf32, #tpu.memory_space<vmem>>, %arg5: memref<16x8xf32, #tpu.memory_space<vmem>>, %arg6: memref<16x8xf32, #tpu.memory_space<vmem>>, %arg7: memref<16x8xf32, #tpu.memory_space<vmem>>) attributes {dimension_semantics = [#tpu.dimension_semantics<parallel>, #tpu.dimension_semantics<arbitrary>], iteration_bounds = array<i64: 1, 1>, scalar_prefetch = 0 : i64, scratch_operands = 1 : i64, tpu.core_type = #tpu.core_type<tc>, window_params = [{transform_indices = @transform_0, window_bounds = array<i64: 8, 32>}, {pipeline_mode = #tpu.pipeline_mode<synchronous>, transform_indices = @transform_1, window_bounds = array<i64: 16, 32>}, {pipeline_mode = #tpu.pipeline_mode<synchronous>, transform_indices = @transform_2, window_bounds = array<i64: 16, 1>}, {transform_indices = @transform_3, window_bounds = array<i64: 16, 8>}, {transform_indices = @transform_4, window_bounds = array<i64: 16, 8>}]} {
    %c0_i32 = arith.constant 0 : i32
    %0 = arith.cmpi eq, %arg1, %c0_i32 : i32
    %1 = arith.extui %0 : i1 to i32
    %c0_i32_0 = arith.constant 0 : i32
    %2 = arith.cmpi ne, %1, %c0_i32_0 : i32
    scf.if %2 {
      %cst_10 = arith.constant 0.000000e+00 : f32
      %12 = vector.broadcast %cst_10 : f32 to vector<16x8xf32>
      %c0_11 = arith.constant 0 : index
      %c0_12 = arith.constant 0 : index
      %13 = vector.load %arg7[%c0_11, %c0_12] : memref<16x8xf32, #tpu.memory_space<vmem>>, vector<16x8xf32>
      tpu.vector_store %arg7[%c0_11, %c0_12], %12 {strides = array<i32>} : memref<16x8xf32, #tpu.memory_space<vmem>>, vector<16x8xf32>,
    } else {
    }
    %c0 = arith.constant 0 : index
    %c0_1 = arith.constant 0 : index
    %3 = vector.load %arg2[%c0, %c0_1] : memref<8x32xf32, #tpu.memory_space<vmem>>, vector<8x32xf32>
    %c0_2 = arith.constant 0 : index
    %c0_3 = arith.constant 0 : index
    %4 = vector.load %arg3[%c0_2, %c0_3] : memref<16x32xf32, #tpu.memory_space<vmem>>, vector<16x32xf32>
    %c0_4 = arith.constant 0 : index
    %c0_5 = arith.constant 0 : index
    %5 = vector.load %arg7[%c0_4, %c0_5] : memref<16x8xf32, #tpu.memory_space<vmem>>, vector<16x8xf32>
    %cst = arith.constant dense<0.000000e+00> : vector<16x8xf32>
    %6 = tpu.matmul %4, %3, %cst {dimension_numbers = #tpu.dot_dimension_numbers<[1], [1], [0], [0], [0, 0, 1, 0], [], []>} : vector<16x32xf32>, vector<8x32xf32>, vector<16x8xf32> -> vector<16x8xf32>
    %7 = arith.addf %5, %6 : vector<16x8xf32>
    %c0_6 = arith.constant 0 : index
    %c0_7 = arith.constant 0 : index
    %8 = vector.load %arg7[%c0_6, %c0_7] : memref<16x8xf32, #tpu.memory_space<vmem>>, vector<16x8xf32>
    tpu.vector_store %arg7[%c0_6, %c0_7], %7 {strides = array<i32>} : memref<16x8xf32, #tpu.memory_space<vmem>>, vector<16x8xf32>,
    %c0_i32_8 = arith.constant 0 : i32
    %9 = arith.cmpi eq, %arg1, %c0_i32_8 : i32
    %10 = arith.extui %9 : i1 to i32
    %c0_i32_9 = arith.constant 0 : i32
    %11 = arith.cmpi ne, %10, %c0_i32_9 : i32
    scf.if %11 {
      %c0_10 = arith.constant 0 : index
      %c0_11 = arith.constant 0 : index
      %12 = vector.load %arg7[%c0_10, %c0_11] : memref<16x8xf32, #tpu.memory_space<vmem>>, vector<16x8xf32>
      %c0_12 = arith.constant 0 : index
      %c0_13 = arith.constant 0 : index
      %13 = vector.load %arg4[%c0_12, %c0_13] : memref<16x1xf32, #tpu.memory_space<vmem>>, vector<16x1xf32>
      %14 = vector.broadcast %13 : vector<16x1xf32> to vector<16x8xf32>
      %15 = arith.addf %12, %14 : vector<16x8xf32>
      %16 = math.tanh %15 : vector<16x8xf32>
      %cst_14 = arith.constant 1.000000e+00 : f32
      %17 = vector.broadcast %cst_14 : f32 to vector<16x8xf32>
      %18 = arith.subf %16, %17 : vector<16x8xf32>
      %19 = math.exp %18 : vector<16x8xf32>
      %c0_15 = arith.constant 0 : index
      %c0_16 = arith.constant 0 : index
      %20 = vector.load %arg6[%c0_15, %c0_16] : memref<16x8xf32, #tpu.memory_space<vmem>>, vector<16x8xf32>
      tpu.vector_store %arg6[%c0_15, %c0_16], %19 {strides = array<i32>} : memref<16x8xf32, #tpu.memory_space<vmem>>, vector<16x8xf32>,
      %21 = arith.mulf %19, %15 : vector<16x8xf32>
      %c0_17 = arith.constant 0 : index
      %c0_18 = arith.constant 0 : index
      %22 = vector.load %arg5[%c0_17, %c0_18] : memref<16x8xf32, #tpu.memory_space<vmem>>, vector<16x8xf32>
      tpu.vector_store %arg5[%c0_17, %c0_18], %21 {strides = array<i32>} : memref<16x8xf32, #tpu.memory_space<vmem>>, vector<16x8xf32>,
    } else {
    }
    return
  }
  func.func @transform_0(%arg0: i32, %arg1: i32) -> (i32, i32) {
    %c0_i32 = arith.constant 0 : i32
    return %arg0, %arg1 : i32, i32
  }
  func.func @transform_1(%arg0: i32, %arg1: i32) -> (i32, i32) {
    %c0_i32 = arith.constant 0 : i32
    %c0_i32_0 = arith.constant 0 : i32
    %c0_i32_1 = arith.constant 0 : i32
    return %c0_i32, %c0_i32_0 : i32, i32
  }
  func.func @transform_2(%arg0: i32, %arg1: i32) -> (i32, i32) {
    %c0_i32 = arith.constant 0 : i32
    %c0_i32_0 = arith.constant 0 : i32
    %c0_i32_1 = arith.constant 0 : i32
    return %c0_i32, %c0_i32_0 : i32, i32
  }
  func.func @transform_3(%arg0: i32, %arg1: i32) -> (i32, i32) {
    %c0_i32 = arith.constant 0 : i32
    %c0_i32_0 = arith.constant 0 : i32
    return %c0_i32, %arg0 : i32, i32
  }
  func.func @transform_4(%arg0: i32, %arg1: i32) -> (i32, i32) {
    %c0_i32 = arith.constant 0 : i32
    %c0_i32_0 = arith.constant 0 : i32
    return %c0_i32, %arg0 : i32, i32
  }
}

</mosaic_0001>

<bundles_post_ra>
// kernel: tpu_custom_call.1
= control target key start
LH: loop header
LB: loop body
LE: loop exit
PB: predicated region body
PF: predicated region fallthrough
CT: control target
= control target key end

     0   :  { %10 = vsyncpa [#allocation4], 0  ;;  %s166_s18 = smov [#allocation3]   ;;  %s229_s0 = inlined_call_operand.hbm [shape: f32[8,32], index: 0, kind: input, shape index: {}]   ;;  %s230_s1 = inlined_call_operand.vmem [shape: f32[16,32], index: 1, kind: input, shape index: {}]   ;;  %s231_s2 = inlined_call_operand.vmem [shape: f32[16,1], index: 2, kind: input, shape index: {}]   ;;  %s232_s3 = inlined_call_operand.vmem [shape: f32[16,8], index: 3, kind: output, shape index: {0}]   ;;  %s233_s4 = inlined_call_operand.vmem [shape: f32[16,8], index: 4, kind: output, shape index: {1}]  }
   0x1   :  { %s16_s17 = sshll.u32 %s229_s0, 4  ;;  %s18_s19 = sshll.u32 %s166_s18, 4  ;;  %s17_s17 = int_to_ptr.hbm [resolvable:$true] %s16_s17  ;;  %s19_s19 = int_to_ptr.vmem [resolvable:$true] %s18_s19 }
   0x2   :  { %21 = dma.hbm_to_vmem [thread:$0]  %s17_s17, 128, %s19_s19, [#allocation4]  }
   0x3   :  { %164 = dma.done.wait [#allocation4], 128  }
   0x4   :  { %165 = vsyncadd [#allocation4], 4294967168  ;;  %v167_v0 = vmov 0   ;;  %vm42_vm0 = vcmask 261120   ;;  %v37_v1 = vld [vmem:[#allocation3] sm:$0xff]  ;;  %v38_v2 = vld [vmem:[%s230_s1] sm:$0xff] }
   0x5   :  { %131 = vset.pattern.permute.xlu0 %v167_v0  ;;  %122 = vmatpush.xpose.msk.msra.mxu0 %vm42_vm0, %v37_v1  ;;  %v39_v3 = vld [vmem:[%s230_s1 + $0x8] sm:$0xff]  ;;  %v85_v4 = vld [vmem:[%s231_s2] sm:$0xff]  ;;  %vm34_vm1 = vcmask 64512   ;;  %v168_v6 = vmov 0.0  }
   0x6   :  { %127 = vmatpush.xpose.msk.msra.mxu1 %vm42_vm0, %v37_v1  ;;  %89 = vperm.xlu0 %131, %v85_v4   ;;  %v86_v5 = vld [vmem:[%s231_s2 + $0x8] sm:$0xff]  ;;  %35 = vst.msk [vmem:[#allocation2] sm:$0xff] %vm34_vm1, %v168_v6 }
   0x7   :  { %36 = vst.msk [vmem:[#allocation2 + $0x8] sm:$0xff] %vm34_vm1, %v168_v6 }
   0x8   :  { %123 = vmatmul.msk.f32.vlgmr.msra.gmra.mxu0 %vm42_vm0, %v38_v2 }
   0x9   :  { %124 = vmatmul.msk.f32.vlgmr.msra.gmra.mxu1 %vm42_vm0, %v39_v3 }
   0xd   :  { %v40_v7 = vld [vmem:[#allocation2] sm:$0xff] }
   0xe   :  { %94 = vperm.xlu0 %131, %v86_v5   ;;  %v41_v8 = vld [vmem:[#allocation2 + $0x8] sm:$0xff] }
  0x78   :  { %v90_v11 = vpop.permute.xlu0 %89 }
  0x80   :  { %v95_v16 = vpop.permute.xlu0 %94 }
  0x85   :  { %v69_v9 = vpop.f32.mrf.mxu0 }
  0x86   :  { %v72_v10 = vpop.f32.mrf.mxu1  ;;  %v75_v12 = vadd.f32 %v69_v9, %v40_v7 }
  0x87   :  { %v76_v13 = vadd.f32 %v72_v10, %v41_v8 }
  0x88   :  { %78 = vst.msk [vmem:[#allocation2] sm:$0xff] %vm34_vm1, %v75_v12 }
  0x89   :  { %79 = vst.msk [vmem:[#allocation2 + $0x8] sm:$0xff] %vm34_vm1, %v76_v13 }
  0x8f   :  { %v83_v14 = vld [vmem:[#allocation2] sm:$0xff] }
  0x90   :  { %v97_v15 = vadd.f32 %v90_v11, %v83_v14  ;;  %v84_v17 = vld [vmem:[#allocation2 + $0x8] sm:$0xff] }
  0x91   :  { %v98_v18 = vadd.f32 %v95_v16, %v84_v17 }
  0x92   :  { %132 = vtanh.f32 %v97_v15 }
  0x93   :  { %134 = vtanh.f32 %v98_v18 }
  0x98   :  { %v133_v19 = vpop.eup %132 }
  0x99   :  { %v135_v20 = vpop.eup %134  ;;  %v125_v21 = vadd.f32 -1.0, %v133_v19 }
  0x9a   :  { %v126_v22 = vadd.f32 -1.0, %v135_v20 }
  0x9b   :  { %v103_v23 = vmul.f32 1.442695, %v125_v21 }
  0x9c   :  { %v105_v24 = vmul.f32 1.442695, %v126_v22 }
  0x9d   :  { %136 = vpow2.f32 %v103_v23 }
  0x9e   :  { %138 = vpow2.f32 %v105_v24 }
  0xa3   :  { %v137_v25 = vpop.eup %136 }
  0xa4   :  { %v139_v26 = vpop.eup %138  ;;  %107 = vst.msk [vmem:[%s233_s4] sm:$0xff] %vm34_vm1, %v137_v25  ;;  %v109_v27 = vmul.f32 %v137_v25, %v97_v15 }
  0xa5   :  { %108 = vst.msk [vmem:[%s233_s4 + $0x8] sm:$0xff] %vm34_vm1, %v139_v26  ;;  %v110_v28 = vmul.f32 %v139_v26, %v98_v18 }
  0xa6   :  { %111 = vst.msk [vmem:[%s232_s3] sm:$0xff] %vm34_vm1, %v109_v27 }
  0xa7   :  { %112 = vst.msk [vmem:[%s232_s3 + $0x8] sm:$0xff] %vm34_vm1, %v110_v28 }
  0xa8   :  { %121 = vsyncpa [#allocation4], 1 }

</bundles_post_ra>
